<compile_context>
chip_gen: v5e
topology: v5e:2x2
jax: 0.10.0
libtpu: 0.0.40
codegen_flags: <defaults>
</compile_context>

<pallas_src>
import functools

import jax
import jax.numpy as jnp
from jax.experimental import pallas as pl
from jax.experimental.pallas import tpu as pltpu


def lstm_kernel(tok_ref, emb_ref, wih_ref, whh_ref, bias_ref, out_ref):
    # tok_ref : SMEM (T,)   int32
    # emb_ref : VMEM (V, E) float32
    # wih_ref : VMEM (E, 4H) mm_dtype
    # whh_ref : VMEM (H, 4H) mm_dtype
    # bias_ref: VMEM (1, 4H) float32
    # out_ref : VMEM (T+1, H) float32  -- rows 0..T-1 = h_t, row T = c_n
    T = out_ref.shape[0] - 1
    H = out_ref.shape[1]

    mm_dtype = wih_ref.dtype

    # In-kernel embedding gather: T dynamic single-row slices of the
    # VMEM-resident table (f32 to keep dynamic sublane slicing simple).
    rows = [emb_ref[pl.ds(tok_ref[t], 1), :] for t in range(T)]
    x = jnp.concatenate(rows, axis=0).astype(mm_dtype)          # (T, E)

    # Hoisted input projection: ONE MXU matmul + bias, f32 accumulation.
    xw = (jnp.dot(x, wih_ref[...], preferred_element_type=jnp.float32)
          + bias_ref[...])                                       # (T, 4H) f32

    whh = whh_ref[...]                                           # (H, 4H) resident

    # self.hidden = init_hidden() -> zero initial state.
    h = jnp.zeros((1, H), jnp.float32)
    c = jnp.zeros((1, H), jnp.float32)

    hs = []
    # T is small and static: full unroll (static slices, scheduler visibility).
    for t in range(T):
        gates = xw[t:t + 1, :] + jnp.dot(
            h.astype(whh.dtype), whh, preferred_element_type=jnp.float32)  # (1, 4H)
        # One sigmoid + one tanh over the whole gates vreg, slice afterwards.
        sig = jax.nn.sigmoid(gates)
        tnh = jnp.tanh(gates)
        i_g = sig[:, 0 * H:1 * H]
        f_g = sig[:, 1 * H:2 * H]
        g_g = tnh[:, 2 * H:3 * H]
        o_g = sig[:, 3 * H:4 * H]
        c = f_g * c + i_g * g_g
        h = o_g * jnp.tanh(c)
        hs.append(h)

    # Single lane-contiguous store for all step outputs + final cell state.
    out_ref[...] = jnp.concatenate(hs + [c], axis=0)


@functools.partial(jax.jit, static_argnames=("mm_dtype",))
def lstm_classifier_forward(tokens, params, *, mm_dtype=jnp.bfloat16):
    """Forward of LSTMclassifier: returns lstm_out [T,1,H], (h_n, c_n) [1,1,H].

    mm_dtype is the MXU operand dtype (bf16 default on ALL generations; the
    accumulation and all gate math stay f32).
    """
    emb = params["emb"].astype(jnp.float32)                      # (V, E)
    wih_t = params["wih_t"].astype(mm_dtype)                     # (E, 4H)
    whh_t = params["whh_t"].astype(mm_dtype)                     # (H, 4H)
    bias = (params["bih"] + params["bhh"]).astype(jnp.float32)   # (1, 4H)

    T = tokens.shape[0]
    H = whh_t.shape[0]
    V = emb.shape[0]

    tok = jnp.clip(tokens.astype(jnp.int32), 0, V - 1)           # defensive clamp

    # No grid: whole-array residents, no pipeline machinery for a 1-shot body.
    # TODO(synk): for large vocabularies keep `emb` in HBM (pl.ANY) and DMA
    # the T needed rows instead of making the whole table VMEM-resident.
    out = pl.pallas_call(
        lstm_kernel,
        out_shape=jax.ShapeDtypeStruct((T + 1, H), jnp.float32),
        in_specs=[
            pl.BlockSpec(memory_space=pltpu.MemorySpace.SMEM),   # tokens
            pl.BlockSpec(memory_space=pltpu.MemorySpace.VMEM),   # emb
            pl.BlockSpec(memory_space=pltpu.MemorySpace.VMEM),   # wih_t
            pl.BlockSpec(memory_space=pltpu.MemorySpace.VMEM),   # whh_t
            pl.BlockSpec(memory_space=pltpu.MemorySpace.VMEM),   # bias
        ],
        out_specs=pl.BlockSpec(memory_space=pltpu.MemorySpace.VMEM),
    )(tok, emb, wih_t, whh_t, bias)

    # PyTorch nn.LSTM output conventions (seq_len, batch=1, hidden).
    lstm_out = out[:T].reshape(T, 1, H)
    h_n = out[T - 1:T].reshape(1, 1, H)      # last step == h_n (1 layer, uni-dir)
    c_n = out[T:T + 1].reshape(1, 1, H)
    return lstm_out, (h_n, c_n)


def init_params(key, vocab_size, embedding_dim, hidden_dim, lstm_out_size, out_size):
    del hidden_dim  # must equal lstm_out_size for the PyTorch module to be consistent
    k1, k2, k3, k4, k5, k6, k7 = jax.random.split(key, 7)
    H = lstm_out_size
    scale = 1.0 / float(jnp.sqrt(H))
    emb = jax.random.normal(k1, (vocab_size, embedding_dim), jnp.float32)
    wih_t = jax.random.uniform(k2, (embedding_dim, 4 * H), jnp.float32, -scale, scale)
    whh_t = jax.random.uniform(k3, (H, 4 * H), jnp.float32, -scale, scale)
    bih = jax.random.uniform(k4, (1, 4 * H), jnp.float32, -scale, scale)
    bhh = jax.random.uniform(k5, (1, 4 * H), jnp.float32, -scale, scale)
    # linear0 is declared in __init__ but never used in forward(); kept for parity.
    # TODO(synk): forward() has no return statement and never applies self.linear0.
    w0 = jax.random.uniform(k6, (out_size, H), jnp.float32, -scale, scale)
    b0 = jax.random.uniform(k7, (out_size,), jnp.float32, -scale, scale)
    return dict(emb=emb, wih_t=wih_t, whh_t=whh_t, bih=bih, bhh=bhh, w0=w0, b0=b0)


def lstm_ref(tokens, p):
    """Pure-JAX f32 reference of the same forward."""
    x = p["emb"][tokens]                                     # (T, E)
    T = x.shape[0]
    H = p["whh_t"].shape[0]
    h = jnp.zeros((1, H), jnp.float32)
    c = jnp.zeros((1, H), jnp.float32)
    outs = []
    for t in range(T):
        gates = x[t:t + 1] @ p["wih_t"] + h @ p["whh_t"] + p["bih"] + p["bhh"]
        i = jax.nn.sigmoid(gates[:, :H])
        f = jax.nn.sigmoid(gates[:, H:2 * H])
        g = jnp.tanh(gates[:, 2 * H:3 * H])
        o = jax.nn.sigmoid(gates[:, 3 * H:])
        c = f * c + i * g
        h = o * jnp.tanh(c)
        outs.append(h)
    return jnp.concatenate(outs, 0), h, c


if __name__ == "__main__":
    # Small, module-consistent sizes: seq=8, vocab=64, embedding_dim=32,
    # hidden_dim == lstm_out_size = 32, out_size=4 (batch is implicitly 1).
    T, V, E, H, OUT = 8, 64, 32, 32, 4

    key = jax.random.PRNGKey(0)
    kp, kt = jax.random.split(key)
    params = init_params(kp, vocab_size=V, embedding_dim=E,
                         hidden_dim=H, lstm_out_size=H, out_size=OUT)
    tokens = jax.random.randint(kt, (T,), 0, V, dtype=jnp.int32)

    ref_out, ref_h, ref_c = lstm_ref(tokens, params)

    # Default path: bf16 MXU operands on every generation, f32 accumulation
    # and f32 gate math (only operand-rounding error remains).
    lstm_out, (h_n, c_n) = lstm_classifier_forward(tokens, params)
    jax.block_until_ready((lstm_out, h_n, c_n))
    assert lstm_out.shape == (T, 1, H)
    assert h_n.shape == (1, 1, H) and c_n.shape == (1, 1, H)
    assert jnp.allclose(lstm_out[:, 0, :], ref_out, atol=3e-2)
    assert jnp.allclose(h_n[0], ref_h, atol=3e-2)
    assert jnp.allclose(c_n[0], ref_c, atol=3e-2)

    # Full-f32 MXU path for a tight numerical check against the reference.
    f32_out, (f32_h, f32_c) = lstm_classifier_forward(tokens, params,
                                                      mm_dtype=jnp.float32)
    jax.block_until_ready((f32_out, f32_h, f32_c))
    assert jnp.allclose(f32_out[:, 0, :], ref_out, atol=1e-5, rtol=1e-5)
    assert jnp.allclose(f32_h[0], ref_h, atol=1e-5, rtol=1e-5)
    assert jnp.allclose(f32_c[0], ref_c, atol=1e-5, rtol=1e-5)

    print("KERNEL_OK")
</pallas_src>

<mosaic_0001>
module attributes {stable_mosaic.version = 11 : i64} {
  func.func @lstm_kernel(%arg0: memref<8xi32, #tpu.memory_space<smem>>, %arg1: memref<64x32xf32, #tpu.memory_space<vmem>>, %arg2: memref<32x128xbf16, #tpu.memory_space<vmem>>, %arg3: memref<32x128xbf16, #tpu.memory_space<vmem>>, %arg4: memref<1x128xf32, #tpu.memory_space<vmem>>, %arg5: memref<9x32xf32, #tpu.memory_space<vmem>>) attributes {dimension_semantics = [], scalar_prefetch = 0 : i64, scratch_operands = 0 : i64, tpu.core_type = #tpu.core_type<tc>} {
    %c0 = arith.constant 0 : index
    %0 = memref.load %arg0[%c0] : memref<8xi32, #tpu.memory_space<smem>>
    %1 = arith.index_cast %0 : i32 to index
    %c0_0 = arith.constant 0 : index
    %2 = vector.load %arg1[%1, %c0_0] : memref<64x32xf32, #tpu.memory_space<vmem>>, vector<1x32xf32>
    %c1 = arith.constant 1 : index
    %3 = memref.load %arg0[%c1] : memref<8xi32, #tpu.memory_space<smem>>
    %4 = arith.index_cast %3 : i32 to index
    %c0_1 = arith.constant 0 : index
    %5 = vector.load %arg1[%4, %c0_1] : memref<64x32xf32, #tpu.memory_space<vmem>>, vector<1x32xf32>
    %c2 = arith.constant 2 : index
    %6 = memref.load %arg0[%c2] : memref<8xi32, #tpu.memory_space<smem>>
    %7 = arith.index_cast %6 : i32 to index
    %c0_2 = arith.constant 0 : index
    %8 = vector.load %arg1[%7, %c0_2] : memref<64x32xf32, #tpu.memory_space<vmem>>, vector<1x32xf32>
    %c3 = arith.constant 3 : index
    %9 = memref.load %arg0[%c3] : memref<8xi32, #tpu.memory_space<smem>>
    %10 = arith.index_cast %9 : i32 to index
    %c0_3 = arith.constant 0 : index
    %11 = vector.load %arg1[%10, %c0_3] : memref<64x32xf32, #tpu.memory_space<vmem>>, vector<1x32xf32>
    %c4 = arith.constant 4 : index
    %12 = memref.load %arg0[%c4] : memref<8xi32, #tpu.memory_space<smem>>
    %13 = arith.index_cast %12 : i32 to index
    %c0_4 = arith.constant 0 : index
    %14 = vector.load %arg1[%13, %c0_4] : memref<64x32xf32, #tpu.memory_space<vmem>>, vector<1x32xf32>
    %c5 = arith.constant 5 : index
    %15 = memref.load %arg0[%c5] : memref<8xi32, #tpu.memory_space<smem>>
    %16 = arith.index_cast %15 : i32 to index
    %c0_5 = arith.constant 0 : index
    %17 = vector.load %arg1[%16, %c0_5] : memref<64x32xf32, #tpu.memory_space<vmem>>, vector<1x32xf32>
    %c6 = arith.constant 6 : index
    %18 = memref.load %arg0[%c6] : memref<8xi32, #tpu.memory_space<smem>>
    %19 = arith.index_cast %18 : i32 to index
    %c0_6 = arith.constant 0 : index
    %20 = vector.load %arg1[%19, %c0_6] : memref<64x32xf32, #tpu.memory_space<vmem>>, vector<1x32xf32>
    %c7 = arith.constant 7 : index
    %21 = memref.load %arg0[%c7] : memref<8xi32, #tpu.memory_space<smem>>
    %22 = arith.index_cast %21 : i32 to index
    %c0_7 = arith.constant 0 : index
    %23 = vector.load %arg1[%22, %c0_7] : memref<64x32xf32, #tpu.memory_space<vmem>>, vector<1x32xf32>
    %24 = tpu.concatenate %2, %5, %8, %11, %14, %17, %20, %23 in 0 : vector<1x32xf32>, vector<1x32xf32>, vector<1x32xf32>, vector<1x32xf32>, vector<1x32xf32>, vector<1x32xf32>, vector<1x32xf32>, vector<1x32xf32> -> vector<8x32xf32>
    %25 = arith.truncf %24 : vector<8x32xf32> to vector<8x32xbf16>
    %c0_8 = arith.constant 0 : index
    %c0_9 = arith.constant 0 : index
    %26 = vector.load %arg2[%c0_8, %c0_9] : memref<32x128xbf16, #tpu.memory_space<vmem>>, vector<32x128xbf16>
    %cst = arith.constant dense<0.000000e+00> : vector<8x128xf32>
    %27 = tpu.matmul %25, %26, %cst {dimension_numbers = #tpu.dot_dimension_numbers<[1], [0], [0], [1], [0, 0, 1, 1], [], []>} : vector<8x32xbf16>, vector<32x128xbf16>, vector<8x128xf32> -> vector<8x128xf32>
    %c0_10 = arith.constant 0 : index
    %c0_11 = arith.constant 0 : index
    %28 = vector.load %arg4[%c0_10, %c0_11] : memref<1x128xf32, #tpu.memory_space<vmem>>, vector<1x128xf32>
    %29 = vector.broadcast %28 : vector<1x128xf32> to vector<8x128xf32>
    %30 = arith.addf %27, %29 : vector<8x128xf32>
    %c0_12 = arith.constant 0 : index
    %c0_13 = arith.constant 0 : index
    %31 = vector.load %arg3[%c0_12, %c0_13] : memref<32x128xbf16, #tpu.memory_space<vmem>>, vector<32x128xbf16>
    %cst_14 = arith.constant 0.000000e+00 : f32
    %32 = vector.broadcast %cst_14 : f32 to vector<1x32xf32>
    %cst_15 = arith.constant 0.000000e+00 : f32
    %33 = vector.broadcast %cst_15 : f32 to vector<1x32xf32>
    %34 = vector.extract_strided_slice %30 {offsets = [0, 0], sizes = [1, 128], strides = [1, 1]} : vector<8x128xf32> to vector<1x128xf32>
    %35 = arith.truncf %32 : vector<1x32xf32> to vector<1x32xbf16>
    %cst_16 = arith.constant dense<0.000000e+00> : vector<1x128xf32>
    %36 = tpu.matmul %35, %31, %cst_16 {dimension_numbers = #tpu.dot_dimension_numbers<[1], [0], [0], [1], [0, 0, 1, 1], [], []>} : vector<1x32xbf16>, vector<32x128xbf16>, vector<1x128xf32> -> vector<1x128xf32>
    %37 = arith.addf %34, %36 : vector<1x128xf32>
    %38 = arith.negf %37 : vector<1x128xf32>
    %39 = math.exp %38 : vector<1x128xf32>
    %cst_17 = arith.constant 1.000000e+00 : f32
    %40 = vector.broadcast %cst_17 : f32 to vector<1x128xf32>
    %41 = arith.addf %40, %39 : vector<1x128xf32>
    %42 = arith.divf %40, %41 : vector<1x128xf32>
    %43 = math.tanh %37 : vector<1x128xf32>
    %44 = vector.extract_strided_slice %42 {offsets = [0, 0], sizes = [1, 32], strides = [1, 1]} : vector<1x128xf32> to vector<1x32xf32>
    %45 = vector.extract_strided_slice %42 {offsets = [0, 32], sizes = [1, 32], strides = [1, 1]} : vector<1x128xf32> to vector<1x32xf32>
    %46 = vector.extract_strided_slice %43 {offsets = [0, 64], sizes = [1, 32], strides = [1, 1]} : vector<1x128xf32> to vector<1x32xf32>
    %47 = vector.extract_strided_slice %42 {offsets = [0, 96], sizes = [1, 32], strides = [1, 1]} : vector<1x128xf32> to vector<1x32xf32>
    %48 = arith.mulf %45, %33 : vector<1x32xf32>
    %49 = arith.mulf %44, %46 : vector<1x32xf32>
    %50 = arith.addf %48, %49 : vector<1x32xf32>
    %51 = math.tanh %50 : vector<1x32xf32>
    %52 = arith.mulf %47, %51 : vector<1x32xf32>
    %53 = vector.extract_strided_slice %30 {offsets = [1, 0], sizes = [1, 128], strides = [1, 1]} : vector<8x128xf32> to vector<1x128xf32>
    %54 = arith.truncf %52 : vector<1x32xf32> to vector<1x32xbf16>
    %cst_18 = arith.constant dense<0.000000e+00> : vector<1x128xf32>
    %55 = tpu.matmul %54, %31, %cst_18 {dimension_numbers = #tpu.dot_dimension_numbers<[1], [0], [0], [1], [0, 0, 1, 1], [], []>} : vector<1x32xbf16>, vector<32x128xbf16>, vector<1x128xf32> -> vector<1x128xf32>
    %56 = arith.addf %53, %55 : vector<1x128xf32>
    %57 = arith.negf %56 : vector<1x128xf32>
    %58 = math.exp %57 : vector<1x128xf32>
    %cst_19 = arith.constant 1.000000e+00 : f32
    %59 = vector.broadcast %cst_19 : f32 to vector<1x128xf32>
    %60 = arith.addf %59, %58 : vector<1x128xf32>
    %61 = arith.divf %59, %60 : vector<1x128xf32>
    %62 = math.tanh %56 : vector<1x128xf32>
    %63 = vector.extract_strided_slice %61 {offsets = [0, 0], sizes = [1, 32], strides = [1, 1]} : vector<1x128xf32> to vector<1x32xf32>
    %64 = vector.extract_strided_slice %61 {offsets = [0, 32], sizes = [1, 32], strides = [1, 1]} : vector<1x128xf32> to vector<1x32xf32>
    %65 = vector.extract_strided_slice %62 {offsets = [0, 64], sizes = [1, 32], strides = [1, 1]} : vector<1x128xf32> to vector<1x32xf32>
    %66 = vector.extract_strided_slice %61 {offsets = [0, 96], sizes = [1, 32], strides = [1, 1]} : vector<1x128xf32> to vector<1x32xf32>
    %67 = arith.mulf %64, %50 : vector<1x32xf32>
    %68 = arith.mulf %63, %65 : vector<1x32xf32>
    %69 = arith.addf %67, %68 : vector<1x32xf32>
    %70 = math.tanh %69 : vector<1x32xf32>
    %71 = arith.mulf %66, %70 : vector<1x32xf32>
    %72 = vector.extract_strided_slice %30 {offsets = [2, 0], sizes = [1, 128], strides = [1, 1]} : vector<8x128xf32> to vector<1x128xf32>
    %73 = arith.truncf %71 : vector<1x32xf32> to vector<1x32xbf16>
    %cst_20 = arith.constant dense<0.000000e+00> : vector<1x128xf32>
    %74 = tpu.matmul %73, %31, %cst_20 {dimension_numbers = #tpu.dot_dimension_numbers<[1], [0], [0], [1], [0, 0, 1, 1], [], []>} : vector<1x32xbf16>, vector<32x128xbf16>, vector<1x128xf32> -> vector<1x128xf32>
    %75 = arith.addf %72, %74 : vector<1x128xf32>
    %76 = arith.negf %75 : vector<1x128xf32>
    %77 = math.exp %76 : vector<1x128xf32>
    %cst_21 = arith.constant 1.000000e+00 : f32
    %78 = vector.broadcast %cst_21 : f32 to vector<1x128xf32>
    %79 = arith.addf %78, %77 : vector<1x128xf32>
    %80 = arith.divf %78, %79 : vector<1x128xf32>
    %81 = math.tanh %75 : vector<1x128xf32>
    %82 = vector.extract_strided_slice %80 {offsets = [0, 0], sizes = [1, 32], strides = [1, 1]} : vector<1x128xf32> to vector<1x32xf32>
    %83 = vector.extract_strided_slice %80 {offsets = [0, 32], sizes = [1, 32], strides = [1, 1]} : vector<1x128xf32> to vector<1x32xf32>
    %84 = vector.extract_strided_slice %81 {offsets = [0, 64], sizes = [1, 32], strides = [1, 1]} : vector<1x128xf32> to vector<1x32xf32>
    %85 = vector.extract_strided_slice %80 {offsets = [0, 96], sizes = [1, 32], strides = [1, 1]} : vector<1x128xf32> to vector<1x32xf32>
    %86 = arith.mulf %83, %69 : vector<1x32xf32>
    %87 = arith.mulf %82, %84 : vector<1x32xf32>
    %88 = arith.addf %86, %87 : vector<1x32xf32>
    %89 = math.tanh %88 : vector<1x32xf32>
    %90 = arith.mulf %85, %89 : vector<1x32xf32>
    %91 = vector.extract_strided_slice %30 {offsets = [3, 0], sizes = [1, 128], strides = [1, 1]} : vector<8x128xf32> to vector<1x128xf32>
    %92 = arith.truncf %90 : vector<1x32xf32> to vector<1x32xbf16>
    %cst_22 = arith.constant dense<0.000000e+00> : vector<1x128xf32>
    %93 = tpu.matmul %92, %31, %cst_22 {dimension_numbers = #tpu.dot_dimension_numbers<[1], [0], [0], [1], [0, 0, 1, 1], [], []>} : vector<1x32xbf16>, vector<32x128xbf16>, vector<1x128xf32> -> vector<1x128xf32>
    %94 = arith.addf %91, %93 : vector<1x128xf32>
    %95 = arith.negf %94 : vector<1x128xf32>
    %96 = math.exp %95 : vector<1x128xf32>
    %cst_23 = arith.constant 1.000000e+00 : f32
    %97 = vector.broadcast %cst_23 : f32 to vector<1x128xf32>
    %98 = arith.addf %97, %96 : vector<1x128xf32>
    %99 = arith.divf %97, %98 : vector<1x128xf32>
    %100 = math.tanh %94 : vector<1x128xf32>
    %101 = vector.extract_strided_slice %99 {offsets = [0, 0], sizes = [1, 32], strides = [1, 1]} : vector<1x128xf32> to vector<1x32xf32>
    %102 = vector.extract_strided_slice %99 {offsets = [0, 32], sizes = [1, 32], strides = [1, 1]} : vector<1x128xf32> to vector<1x32xf32>
    %103 = vector.extract_strided_slice %100 {offsets = [0, 64], sizes = [1, 32], strides = [1, 1]} : vector<1x128xf32> to vector<1x32xf32>
    %104 = vector.extract_strided_slice %99 {offsets = [0, 96], sizes = [1, 32], strides = [1, 1]} : vector<1x128xf32> to vector<1x32xf32>
    %105 = arith.mulf %102, %88 : vector<1x32xf32>
    %106 = arith.mulf %101, %103 : vector<1x32xf32>
    %107 = arith.addf %105, %106 : vector<1x32xf32>
    %108 = math.tanh %107 : vector<1x32xf32>
    %109 = arith.mulf %104, %108 : vector<1x32xf32>
    %110 = vector.extract_strided_slice %30 {offsets = [4, 0], sizes = [1, 128], strides = [1, 1]} : vector<8x128xf32> to vector<1x128xf32>
    %111 = arith.truncf %109 : vector<1x32xf32> to vector<1x32xbf16>
    %cst_24 = arith.constant dense<0.000000e+00> : vector<1x128xf32>
    %112 = tpu.matmul %111, %31, %cst_24 {dimension_numbers = #tpu.dot_dimension_numbers<[1], [0], [0], [1], [0, 0, 1, 1], [], []>} : vector<1x32xbf16>, vector<32x128xbf16>, vector<1x128xf32> -> vector<1x128xf32>
    %113 = arith.addf %110, %112 : vector<1x128xf32>
    %114 = arith.negf %113 : vector<1x128xf32>
    %115 = math.exp %114 : vector<1x128xf32>
    %cst_25 = arith.constant 1.000000e+00 : f32
    %116 = vector.broadcast %cst_25 : f32 to vector<1x128xf32>
    %117 = arith.addf %116, %115 : vector<1x128xf32>
    %118 = arith.divf %116, %117 : vector<1x128xf32>
    %119 = math.tanh %113 : vector<1x128xf32>
    %120 = vector.extract_strided_slice %118 {offsets = [0, 0], sizes = [1, 32], strides = [1, 1]} : vector<1x128xf32> to vector<1x32xf32>
    %121 = vector.extract_strided_slice %118 {offsets = [0, 32], sizes = [1, 32], strides = [1, 1]} : vector<1x128xf32> to vector<1x32xf32>
    %122 = vector.extract_strided_slice %119 {offsets = [0, 64], sizes = [1, 32], strides = [1, 1]} : vector<1x128xf32> to vector<1x32xf32>
    %123 = vector.extract_strided_slice %118 {offsets = [0, 96], sizes = [1, 32], strides = [1, 1]} : vector<1x128xf32> to vector<1x32xf32>
    %124 = arith.mulf %121, %107 : vector<1x32xf32>
    %125 = arith.mulf %120, %122 : vector<1x32xf32>
    %126 = arith.addf %124, %125 : vector<1x32xf32>
    %127 = math.tanh %126 : vector<1x32xf32>
    %128 = arith.mulf %123, %127 : vector<1x32xf32>
    %129 = vector.extract_strided_slice %30 {offsets = [5, 0], sizes = [1, 128], strides = [1, 1]} : vector<8x128xf32> to vector<1x128xf32>
    %130 = arith.truncf %128 : vector<1x32xf32> to vector<1x32xbf16>
    %cst_26 = arith.constant dense<0.000000e+00> : vector<1x128xf32>
    %131 = tpu.matmul %130, %31, %cst_26 {dimension_numbers = #tpu.dot_dimension_numbers<[1], [0], [0], [1], [0, 0, 1, 1], [], []>} : vector<1x32xbf16>, vector<32x128xbf16>, vector<1x128xf32> -> vector<1x128xf32>
    %132 = arith.addf %129, %131 : vector<1x128xf32>
    %133 = arith.negf %132 : vector<1x128xf32>
    %134 = math.exp %133 : vector<1x128xf32>
    %cst_27 = arith.constant 1.000000e+00 : f32
    %135 = vector.broadcast %cst_27 : f32 to vector<1x128xf32>
    %136 = arith.addf %135, %134 : vector<1x128xf32>
    %137 = arith.divf %135, %136 : vector<1x128xf32>
    %138 = math.tanh %132 : vector<1x128xf32>
    %139 = vector.extract_strided_slice %137 {offsets = [0, 0], sizes = [1, 32], strides = [1, 1]} : vector<1x128xf32> to vector<1x32xf32>
    %140 = vector.extract_strided_slice %137 {offsets = [0, 32], sizes = [1, 32], strides = [1, 1]} : vector<1x128xf32> to vector<1x32xf32>
    %141 = vector.extract_strided_slice %138 {offsets = [0, 64], sizes = [1, 32], strides = [1, 1]} : vector<1x128xf32> to vector<1x32xf32>
    %142 = vector.extract_strided_slice %137 {offsets = [0, 96], sizes = [1, 32], strides = [1, 1]} : vector<1x128xf32> to vector<1x32xf32>
    %143 = arith.mulf %140, %126 : vector<1x32xf32>
    %144 = arith.mulf %139, %141 : vector<1x32xf32>
    %145 = arith.addf %143, %144 : vector<1x32xf32>
    %146 = math.tanh %145 : vector<1x32xf32>
    %147 = arith.mulf %142, %146 : vector<1x32xf32>
    %148 = vector.extract_strided_slice %30 {offsets = [6, 0], sizes = [1, 128], strides = [1, 1]} : vector<8x128xf32> to vector<1x128xf32>
    %149 = arith.truncf %147 : vector<1x32xf32> to vector<1x32xbf16>
    %cst_28 = arith.constant dense<0.000000e+00> : vector<1x128xf32>
    %150 = tpu.matmul %149, %31, %cst_28 {dimension_numbers = #tpu.dot_dimension_numbers<[1], [0], [0], [1], [0, 0, 1, 1], [], []>} : vector<1x32xbf16>, vector<32x128xbf16>, vector<1x128xf32> -> vector<1x128xf32>
    %151 = arith.addf %148, %150 : vector<1x128xf32>
    %152 = arith.negf %151 : vector<1x128xf32>
    %153 = math.exp %152 : vector<1x128xf32>
    %cst_29 = arith.constant 1.000000e+00 : f32
    %154 = vector.broadcast %cst_29 : f32 to vector<1x128xf32>
    %155 = arith.addf %154, %153 : vector<1x128xf32>
    %156 = arith.divf %154, %155 : vector<1x128xf32>
    %157 = math.tanh %151 : vector<1x128xf32>
    %158 = vector.extract_strided_slice %156 {offsets = [0, 0], sizes = [1, 32], strides = [1, 1]} : vector<1x128xf32> to vector<1x32xf32>
    %159 = vector.extract_strided_slice %156 {offsets = [0, 32], sizes = [1, 32], strides = [1, 1]} : vector<1x128xf32> to vector<1x32xf32>
    %160 = vector.extract_strided_slice %157 {offsets = [0, 64], sizes = [1, 32], strides = [1, 1]} : vector<1x128xf32> to vector<1x32xf32>
    %161 = vector.extract_strided_slice %156 {offsets = [0, 96], sizes = [1, 32], strides = [1, 1]} : vector<1x128xf32> to vector<1x32xf32>
    %162 = arith.mulf %159, %145 : vector<1x32xf32>
    %163 = arith.mulf %158, %160 : vector<1x32xf32>
    %164 = arith.addf %162, %163 : vector<1x32xf32>
    %165 = math.tanh %164 : vector<1x32xf32>
    %166 = arith.mulf %161, %165 : vector<1x32xf32>
    %167 = vector.extract_strided_slice %30 {offsets = [7, 0], sizes = [1, 128], strides = [1, 1]} : vector<8x128xf32> to vector<1x128xf32>
    %168 = arith.truncf %166 : vector<1x32xf32> to vector<1x32xbf16>
    %cst_30 = arith.constant dense<0.000000e+00> : vector<1x128xf32>
    %169 = tpu.matmul %168, %31, %cst_30 {dimension_numbers = #tpu.dot_dimension_numbers<[1], [0], [0], [1], [0, 0, 1, 1], [], []>} : vector<1x32xbf16>, vector<32x128xbf16>, vector<1x128xf32> -> vector<1x128xf32>
    %170 = arith.addf %167, %169 : vector<1x128xf32>
    %171 = arith.negf %170 : vector<1x128xf32>
    %172 = math.exp %171 : vector<1x128xf32>
    %cst_31 = arith.constant 1.000000e+00 : f32
    %173 = vector.broadcast %cst_31 : f32 to vector<1x128xf32>
    %174 = arith.addf %173, %172 : vector<1x128xf32>
    %175 = arith.divf %173, %174 : vector<1x128xf32>
    %176 = math.tanh %170 : vector<1x128xf32>
    %177 = vector.extract_strided_slice %175 {offsets = [0, 0], sizes = [1, 32], strides = [1, 1]} : vector<1x128xf32> to vector<1x32xf32>
    %178 = vector.extract_strided_slice %175 {offsets = [0, 32], sizes = [1, 32], strides = [1, 1]} : vector<1x128xf32> to vector<1x32xf32>
    %179 = vector.extract_strided_slice %176 {offsets = [0, 64], sizes = [1, 32], strides = [1, 1]} : vector<1x128xf32> to vector<1x32xf32>
    %180 = vector.extract_strided_slice %175 {offsets = [0, 96], sizes = [1, 32], strides = [1, 1]} : vector<1x128xf32> to vector<1x32xf32>
    %181 = arith.mulf %178, %164 : vector<1x32xf32>
    %182 = arith.mulf %177, %179 : vector<1x32xf32>
    %183 = arith.addf %181, %182 : vector<1x32xf32>
    %184 = math.tanh %183 : vector<1x32xf32>
    %185 = arith.mulf %180, %184 : vector<1x32xf32>
    %186 = tpu.concatenate %52, %71, %90, %109, %128, %147, %166, %185, %183 in 0 : vector<1x32xf32>, vector<1x32xf32>, vector<1x32xf32>, vector<1x32xf32>, vector<1x32xf32>, vector<1x32xf32>, vector<1x32xf32>, vector<1x32xf32>, vector<1x32xf32> -> vector<9x32xf32>
    %c0_32 = arith.constant 0 : index
    %c0_33 = arith.constant 0 : index
    %187 = vector.load %arg5[%c0_32, %c0_33] : memref<9x32xf32, #tpu.memory_space<vmem>>, vector<9x32xf32>
    tpu.vector_store %arg5[%c0_32, %c0_33], %186 {strides = array<i32>} : memref<9x32xf32, #tpu.memory_space<vmem>>, vector<9x32xf32>,
    return
  }
}

</mosaic_0001>

<bundles_post_ra>
// kernel: lstm_classifier_forward.1
= control target key start
LH: loop header
LB: loop body
LE: loop exit
PB: predicated region body
PF: predicated region fallthrough
CT: control target
= control target key end

     0   :  { %10 = vsyncpa [#allocation3], 0  ;;  %s820_s21 = smov [#allocation2]   ;;  %s1003_s0 = inlined_call_operand.vmem [shape: s32[8], index: 0, kind: input, shape index: {}]   ;;  %s1004_s1 = inlined_call_operand.vmem [shape: f32[64,32], index: 1, kind: input, shape index: {}]   ;;  %s1005_s2 = inlined_call_operand.vmem [shape: bf16[32,128], index: 2, kind: input, shape index: {}]   ;;  %s1006_s3 = inlined_call_operand.vmem [shape: bf16[32,128], index: 3, kind: input, shape index: {}]   ;;  %s1007_s4 = inlined_call_operand.vmem [shape: f32[1,128], index: 4, kind: input, shape index: {}]   ;;  %s1008_s5 = inlined_call_operand.vmem [shape: f32[9,32], index: 5, kind: output, shape index: {}]  }
   0x1   :  { %s16_s20 = sshll.u32 %s1003_s0, 4  ;;  %s17_s20 = int_to_ptr.vmem [resolvable:$true] %s16_s20 }
   0x2   :  { %19 = dma.vmem_to_smem %s17_s20, 16, %s820_s21, [#allocation3]  }
   0x3   :  { %818 = dma.done.wait [#allocation3], 16  }
   0x4   :  { %819 = vsyncadd [#allocation3], 4294967280 }
   0x5   :  { %32 = sfence }
   0x6   :  { %v860_v0 = vld [vmem:[%s1006_s3 + $0x8] sm:$0xff]  ;;  %s34_s26 = sld [smem:[#allocation2]]  ;;  %v869_v2 = vld [vmem:[%s1006_s3] sm:$0xff]  ;;  %vm79_vm0 = vcmask 1040384   ;;  %v821_v6 = vmov 0   ;;  %vm81_vm1 = vcmask 1041408  }
   0x7   :  { %v734_v1 = vld [vmem:[%s1005_s2 + $0x8] sm:$0xff]  ;;  %s694_s27 = sld [smem:[#allocation2 + $0x1]]  ;;  %156 = vmatpush.bf16.msra.mxu1 %v860_v0  ;;  %v733_v3 = vld [vmem:[%s1005_s2] sm:$0xff]  ;;  %214 = vmatpush.bf16.msra.mxu2 %v860_v0  ;;  %vm83_vm2 = vcmask 1042432   ;;  %vm85_vm3 = vcmask 1043456   ;;  %vm87_vm4 = vcmask 1044480  }
   0x8   :  { %124 = vmatpush.bf16.msra.mxu0 %v734_v1  ;;  %s695_s6 = sld [smem:[#allocation2 + $0x2]]  ;;  %280 = vmatpush.bf16.msra.mxu3 %v860_v0  ;;  %vm89_vm5 = vcmask 1045504   ;;  %vm91_vm6 = vcmask 1046528   ;;  %vm114_vm7 = vcmask 261120   ;;  %v741_v29 = vld [vmem:[%s1007_s4] ss:$0 sm:$0xff] }
   0x9   :  { %s696_s7 = sld [smem:[#allocation2 + $0x3]]  ;;  %s823_s4 = smov 32  }
   0xa   :  { %s697_s8 = sld [smem:[#allocation2 + $0x4]] }
   0xb   :  { %s876_s9 = sld [smem:[#allocation2 + $0x5]]  ;;  %157 = vmatpush.bf16.msra.mxu1 %v869_v2  ;;  %215 = vmatpush.bf16.msra.mxu2 %v869_v2 }
   0xc   :  { %125 = vmatpush.bf16.msra.mxu0 %v733_v3  ;;  %s35_s11 = scalar_lea.vmem %s1004_s1, %s34_s26  ;;  %s882_s12 = sld [smem:[#allocation2 + $0x6]]  ;;  %281 = vmatpush.bf16.msra.mxu3 %v869_v2 }
   0xd   :  { %s38_s14 = scalar_lea.vmem %s1004_s1, %s694_s27  ;;  %s887_s15 = sld [smem:[#allocation2 + $0x7]]  ;;  %v36_v4 = vld [vmem:[%s35_s11] sm:$0x1] }
   0xe   :  { %v39_v5 = vld [vmem:[%s38_s14] sm:$0x1]  ;;  %s41_s18 = scalar_lea.vmem %s1004_s1, %s695_s6  ;;  %158 = vmatmul.bf16.vlgmr.msra.gmra.mxu1 %v821_v6 }
   0xf   :  { %412 = vmatpush.bf16.msrb.mxu1 %v860_v0  ;;  %v42_v7 = vld [vmem:[%s41_s18] sm:$0x1]  ;;  %s44_s21 = scalar_lea.vmem %s1004_s1, %s696_s7  ;;  %v59_v8 = vrot.slane %v39_v5, 7  ;;  %477 = vmatpush.bf16.msrb.mxu2 %v860_v0 }
  0x10   :  { %345 = vmatpush.bf16.msrb.mxu0 %v860_v0  ;;  %v45_v9 = vld [vmem:[%s44_s21] sm:$0x1]  ;;  %s47_s24 = scalar_lea.vmem %s1004_s1, %s697_s8  ;;  %v62_v10 = vrot.slane %v42_v7, 6  ;;  %544 = vmatpush.bf16.msrb.mxu3 %v860_v0 }
  0x11   :  { %v48_v11 = vld [vmem:[%s47_s24] sm:$0x1]  ;;  %s50_s27 = scalar_lea.vmem %s1004_s1, %s876_s9  ;;  %v65_v12 = vrot.slane %v45_v9, 5  ;;  %v80_v13 = vsel %vm79_vm0, %v36_v4, %v59_v8  ;;  %s822_s9 = smov 64  }
  0x12   :  { %v51_v14 = vld [vmem:[%s50_s27] sm:$0x1]  ;;  %s53_s29 = scalar_lea.vmem %s1004_s1, %s882_s12  ;;  %v68_v15 = vrot.slane %v48_v11, 4  ;;  %v82_v16 = vsel %vm81_vm1, %v80_v13, %v62_v10 }
  0x13   :  { %413 = vmatpush.bf16.msrb.mxu1 %v869_v2  ;;  %v54_v17 = vld [vmem:[%s53_s29] sm:$0x1]  ;;  %s56_s7 = scalar_lea.vmem %s1004_s1, %s887_s15  ;;  %v71_v18 = vrot.slane %v51_v14, 3  ;;  %v84_v19 = vsel %vm83_vm2, %v82_v16, %v65_v12  ;;  %478 = vmatpush.bf16.msrb.mxu2 %v869_v2 }
  0x14   :  { %346 = vmatpush.bf16.msrb.mxu0 %v869_v2  ;;  %v57_v20 = vld [vmem:[%s56_s7] sm:$0x1]  ;;  %v74_v21 = vrot.slane %v54_v17, 2  ;;  %v86_v22 = vsel %vm85_vm3, %v84_v19, %v68_v15  ;;  %545 = vmatpush.bf16.msrb.mxu3 %v869_v2 }
  0x15   :  { %v77_v23 = vrot.slane %v57_v20, 1  ;;  %v88_v24 = vsel %vm87_vm4, %v86_v22, %v71_v18 }
  0x16   :  { %v90_v25 = vsel %vm89_vm5, %v88_v24, %v74_v21 }
  0x17   :  { %v92_v26 = vsel %vm91_vm6, %v90_v25, %v77_v23 }
  0x18   :  { %v93_v27 = vpack.c.bf16 %v92_v26, %v92_v26 }
  0x1a   :  { %709 = vmatmul.msk.bf16.vlgmr.msra.gmra.mxu0 %vm114_vm7, %v93_v27 }
  0x1b   :  { %609 = vmatpush.bf16.msra.mxu0 %v860_v0 }
  0x1f   :  { %610 = vmatpush.bf16.msra.mxu0 %v869_v2 }
  0x8b   :  { %v159_v28 = vpop.f32.mrf.mxu1 }
  0x93   :  { %v161_v30 = vpop.f32.mrf.mxu1 }
  0x97   :  { %v127_v31 = vpop.f32.mrf.mxu0 }
  0x98   :  { %v933_v32 = vadd.f32 %v741_v29, %v127_v31 }
  0x9a   :  { %v163_v33 = vadd.f32 %v159_v28, %v933_v32 }
  0x9c   :  { %742 = vtanh.f32 %v163_v33  ;;  %v718_v36 = vmul.f32 -1.442695, %v163_v33 }
  0x9e   :  { %744 = vpow2.f32 %v718_v36 }
  0x9f   :  { %v129_v34 = vpop.f32.mrf.mxu0 }
  0xa2   :  { %v743_v35 = vpop.eup %742 }
  0xa3   :  { %186 = vrot.lane.b32.xlu0 %v743_v35, %s822_s9 }
  0xa4   :  { %v745_v37 = vpop.eup %744 }
  0xa5   :  { %v167_v38 = vadd.f32 1.0, %v745_v37 }
  0xa7   :  { %746 = vrcp.f32 %v167_v38  ;;  %v179_v44 = vand.u32 2147483648, %v167_v38  ;;  %vm173_vm9 = vweird.f32 %v167_v38  ;;  %v177_v45 = vand.u32 2147483647, %v167_v38 }
  0xa9   :  { %v180_v47 = vor.u32 1.1754944e-38, %v179_v44  ;;  %vm178_vm11 = vcmp.eq.f32.partialorder %v177_v45, 8.507059e+37 }
  0xad   :  { %v747_v39 = vpop.eup %746 }
  0xae   :  { %v169_v40 = vmul.f32 %v747_v39, %v167_v38  ;;  %vm174_vm8 = vweird.f32 %v747_v39 }
  0xaf   :  { %vm175_vm10 = vmor %vm173_vm9, %vm174_vm8 }
  0xb0   :  { %v170_v41 = vsub.f32 1.0, %v169_v40 }
  0xb2   :  { %v171_v42 = vmul.f32 %v747_v39, %v170_v41 }
  0xb4   :  { %v172_v43 = vadd.f32 %v747_v39, %v171_v42 }
  0xb6   :  { %v176_v46 = vsel %vm175_vm10, %v747_v39, %v172_v43 }
  0xb7   :  { %v181_v49 = vsel %vm178_vm11, %v180_v47, %v176_v46 }
  0xb8   :  { %v184_v51 = vmul.f32 0.0, %v181_v49 }
 0x115   :  { %v187_v48 = vpop.permute.xlu0 %186 }
 0x116   :  { %v189_v50 = vmul.f32 %v187_v48, %v181_v49 }
 0x118   :  { %191 = vrot.lane.b32.xlu0 %v189_v50, %s823_s4 }
 0x18a   :  { %v192_v52 = vpop.permute.xlu0 %191 }
 0x18b   :  { %v194_v53 = vadd.f32 %v192_v52, %v184_v51 }
 0x18d   :  { %748 = vtanh.f32 %v194_v53  ;;  %v246_v15 = vrot.slane %v194_v53, 7 }
 0x193   :  { %v749_v54 = vpop.eup %748 }
 0x194   :  { %197 = vrot.lane.b32.xlu1 %v749_v54, %s822_s9 }
 0x206   :  { %v198_v55 = vpop.permute.xlu1 %197 }
 0x207   :  { %v939_v56 = vmul.f32 %v198_v55, %v181_v49 }
 0x209   :  { %v201_v57 = vpack.c.bf16 %v939_v56, %v939_v56 }
 0x20b   :  { %203 = vrot.lane.b32.xlu1 %v201_v57, %s823_s4 }
 0x27d   :  { %v204_v58 = vpop.permute.xlu1 %203 }
 0x27e   :  { %719 = vmatmul.msk.bf16.vlgmr.msra.gmra.mxu2 %vm114_vm7, %v204_v58 }
 0x301   :  { %v217_v59 = vpop.f32.mrf.mxu2 }
 0x302   :  { %v222_v60 = vrot.slane %v217_v59, 7 }
 0x304   :  { %v224_v61 = vadd.f32 %v222_v60, %v933_v32 }
 0x306   :  { %750 = vtanh.f32 %v224_v61  ;;  %v720_v0 = vmul.f32 -1.442695, %v224_v61 }
 0x308   :  { %752 = vpow2.f32 %v720_v0 }
 0x309   :  { %v219_v62 = vpop.f32.mrf.mxu2 }
 0x30c   :  { %v751_v63 = vpop.eup %750 }
 0x30d   :  { %250 = vrot.lane.b32.xlu2 %v751_v63, %s822_s9 }
 0x30e   :  { %v753_v1 = vpop.eup %752 }
 0x30f   :  { %v228_v2 = vadd.f32 1.0, %v753_v1 }
 0x311   :  { %754 = vrcp.f32 %v228_v2  ;;  %v240_v8 = vand.u32 2147483648, %v228_v2  ;;  %vm234_vm13 = vweird.f32 %v228_v2  ;;  %v238_v9 = vand.u32 2147483647, %v228_v2 }
 0x313   :  { %v241_v11 = vor.u32 1.1754944e-38, %v240_v8  ;;  %vm239_vm15 = vcmp.eq.f32.partialorder %v238_v9, 8.507059e+37 }
 0x317   :  { %v755_v3 = vpop.eup %754 }
 0x318   :  { %v230_v4 = vmul.f32 %v755_v3, %v228_v2  ;;  %vm235_vm12 = vweird.f32 %v755_v3 }
 0x319   :  { %vm236_vm14 = vmor %vm234_vm13, %vm235_vm12 }
 0x31a   :  { %v231_v5 = vsub.f32 1.0, %v230_v4 }
 0x31c   :  { %v232_v6 = vmul.f32 %v755_v3, %v231_v5 }
 0x31e   :  { %v233_v7 = vadd.f32 %v755_v3, %v232_v6 }
 0x320   :  { %v237_v10 = vsel %vm236_vm14, %v755_v3, %v233_v7 }
 0x321   :  { %v242_v13 = vsel %vm239_vm15, %v241_v11, %v237_v10 }
 0x322   :  { %v248_v16 = vmul.f32 %v246_v15, %v242_v13 }
 0x367   :  { %v251_v12 = vpop.permute.xlu2 %250 }
 0x368   :  { %v253_v14 = vmul.f32 %v251_v12, %v242_v13 }
 0x36a   :  { %255 = vrot.lane.b32.xlu2 %v253_v14, %s823_s4 }
 0x3c4   :  { %v256_v17 = vpop.permute.xlu2 %255 }
 0x3c5   :  { %v258_v18 = vadd.f32 %v256_v17, %v248_v16 }
 0x3c7   :  { %756 = vtanh.f32 %v258_v18  ;;  %v312_v46 = vrot.slane %v258_v18, 7 }
 0x3cd   :  { %v757_v19 = vpop.eup %756 }
 0x3ce   :  { %261 = vrot.lane.b32.xlu0 %v757_v19, %s822_s9 }
 0x440   :  { %v262_v20 = vpop.permute.xlu0 %261 }
 0x441   :  { %v264_v21 = vmul.f32 %v262_v20, %v242_v13 }
 0x443   :  { %v265_v22 = vpack.c.bf16 %v264_v21, %v264_v21  ;;  %v664_v53 = vsel %vm79_vm0, %v939_v56, %v264_v21 }
 0x445   :  { %v267_v23 = vshrl.u32 %v265_v22, 16 }
 0x447   :  { %269 = vrot.lane.b32.xlu1 %v267_v23, %s823_s4 }
 0x4b9   :  { %v270_v24 = vpop.permute.xlu1 %269 }
 0x4ba   :  { %721 = vmatmul.msk.bf16.vlgmr.msra.gmra.mxu3 %vm114_vm7, %v270_v24 }
 0x53d   :  { %v283_v25 = vpop.f32.mrf.mxu3 }
 0x53e   :  { %v288_v26 = vrot.slane %v283_v25, 6 }
 0x540   :  { %v290_v27 = vadd.f32 %v288_v26, %v933_v32 }
 0x542   :  { %758 = vtanh.f32 %v290_v27  ;;  %v722_v30 = vmul.f32 -1.442695, %v290_v27 }
 0x544   :  { %760 = vpow2.f32 %v722_v30 }
 0x545   :  { %v285_v28 = vpop.f32.mrf.mxu3 }
 0x548   :  { %v759_v29 = vpop.eup %758 }
 0x549   :  { %316 = vrot.lane.b32.xlu2 %v759_v29, %s822_s9 }
 0x54a   :  { %v761_v31 = vpop.eup %760 }
 0x54b   :  { %v294_v33 = vadd.f32 1.0, %v761_v31 }
 0x54d   :  { %762 = vrcp.f32 %v294_v33  ;;  %v306_v39 = vand.u32 2147483648, %v294_v33  ;;  %vm300_vm9 = vweird.f32 %v294_v33  ;;  %v304_v40 = vand.u32 2147483647, %v294_v33 }
 0x54f   :  { %v307_v42 = vor.u32 1.1754944e-38, %v306_v39  ;;  %vm305_vm11 = vcmp.eq.f32.partialorder %v304_v40, 8.507059e+37 }
 0x553   :  { %v763_v34 = vpop.eup %762 }
 0x554   :  { %v296_v35 = vmul.f32 %v763_v34, %v294_v33  ;;  %vm301_vm8 = vweird.f32 %v763_v34 }
 0x555   :  { %vm302_vm10 = vmor %vm300_vm9, %vm301_vm8 }
 0x556   :  { %v297_v36 = vsub.f32 1.0, %v296_v35 }
 0x558   :  { %v298_v37 = vmul.f32 %v763_v34, %v297_v36 }
 0x55a   :  { %v299_v38 = vadd.f32 %v763_v34, %v298_v37 }
 0x55c   :  { %v303_v41 = vsel %vm302_vm10, %v763_v34, %v299_v38 }
 0x55d   :  { %v308_v44 = vsel %vm305_vm11, %v307_v42, %v303_v41 }
 0x55e   :  { %v314_v47 = vmul.f32 %v312_v46, %v308_v44 }
 0x5a3   :  { %v317_v43 = vpop.permute.xlu2 %316 }
 0x5a4   :  { %v319_v45 = vmul.f32 %v317_v43, %v308_v44 }
 0x5a6   :  { %321 = vrot.lane.b32.xlu0 %v319_v45, %s823_s4 }
 0x618   :  { %v322_v48 = vpop.permute.xlu0 %321 }
 0x619   :  { %v324_v49 = vadd.f32 %v322_v48, %v314_v47 }
 0x61b   :  { %764 = vtanh.f32 %v324_v49  ;;  %v377_v14 = vrot.slane %v324_v49, 7 }
 0x621   :  { %v765_v50 = vpop.eup %764 }
 0x622   :  { %327 = vrot.lane.b32.xlu1 %v765_v50, %s822_s9 }
 0x694   :  { %v328_v51 = vpop.permute.xlu1 %327 }
 0x695   :  { %v330_v52 = vmul.f32 %v328_v51, %v308_v44 }
 0x697   :  { %v331_v54 = vpack.c.bf16 %v330_v52, %v330_v52  ;;  %v665_v55 = vsel %vm81_vm1, %v664_v53, %v330_v52 }
 0x699   :  { %v333_v57 = vrot.slane %v331_v54, 1 }
 0x69b   :  { %334 = vrot.lane.b32.xlu2 %v333_v57, %s823_s4 }
 0x6f5   :  { %v335_v58 = vpop.permute.xlu2 %334 }
 0x6f6   :  { %723 = vmatmul.msk.bf16.vlgmr.msrb.gmra.mxu0 %vm114_vm7, %v335_v58 }
 0x773   :  { %v348_v59 = vpop.f32.mrf.mxu0 }
 0x774   :  { %v353_v60 = vrot.slane %v348_v59, 5 }
 0x776   :  { %v355_v61 = vadd.f32 %v353_v60, %v933_v32 }
 0x778   :  { %766 = vtanh.f32 %v355_v61  ;;  %v724_v0 = vmul.f32 -1.442695, %v355_v61 }
 0x77a   :  { %768 = vpow2.f32 %v724_v0 }
 0x77b   :  { %v350_v62 = vpop.f32.mrf.mxu0 }
 0x77e   :  { %v767_v63 = vpop.eup %766 }
 0x77f   :  { %381 = vrot.lane.b32.xlu0 %v767_v63, %s822_s9 }
 0x780   :  { %v769_v56 = vpop.eup %768 }
 0x781   :  { %v359_v1 = vadd.f32 1.0, %v769_v56 }
 0x783   :  { %770 = vrcp.f32 %v359_v1  ;;  %v371_v7 = vand.u32 2147483648, %v359_v1  ;;  %vm365_vm1 = vweird.f32 %v359_v1  ;;  %v369_v8 = vand.u32 2147483647, %v359_v1 }
 0x785   :  { %v372_v10 = vor.u32 1.1754944e-38, %v371_v7  ;;  %vm370_vm13 = vcmp.eq.f32.partialorder %v369_v8, 8.507059e+37 }
 0x789   :  { %v771_v2 = vpop.eup %770 }
 0x78a   :  { %v361_v3 = vmul.f32 %v771_v2, %v359_v1  ;;  %vm366_vm0 = vweird.f32 %v771_v2 }
 0x78b   :  { %vm367_vm12 = vmor %vm365_vm1, %vm366_vm0 }
 0x78c   :  { %v362_v4 = vsub.f32 1.0, %v361_v3 }
 0x78e   :  { %v363_v5 = vmul.f32 %v771_v2, %v362_v4 }
 0x790   :  { %v364_v6 = vadd.f32 %v771_v2, %v363_v5 }
 0x792   :  { %v368_v9 = vsel %vm367_vm12, %v771_v2, %v364_v6 }
 0x793   :  { %v373_v12 = vsel %vm370_vm13, %v372_v10, %v368_v9 }
 0x794   :  { %v379_v15 = vmul.f32 %v377_v14, %v373_v12 }
 0x7f1   :  { %v382_v11 = vpop.permute.xlu0 %381 }
 0x7f2   :  { %v384_v13 = vmul.f32 %v382_v11, %v373_v12 }
 0x7f4   :  { %386 = vrot.lane.b32.xlu1 %v384_v13, %s823_s4 }
 0x866   :  { %v387_v16 = vpop.permute.xlu1 %386 }
 0x867   :  { %v389_v17 = vadd.f32 %v387_v16, %v379_v15 }
 0x869   :  { %772 = vtanh.f32 %v389_v17  ;;  %v444_v47 = vrot.slane %v389_v17, 7 }
 0x86f   :  { %v773_v18 = vpop.eup %772 }
 0x870   :  { %392 = vrot.lane.b32.xlu2 %v773_v18, %s822_s9 }
 0x8ca   :  { %v393_v19 = vpop.permute.xlu2 %392 }
 0x8cb   :  { %v395_v20 = vmul.f32 %v393_v19, %v373_v12 }
 0x8cd   :  { %v396_v21 = vpack.c.bf16 %v395_v20, %v395_v20  ;;  %v666_v22 = vsel %vm83_vm2, %v665_v55, %v395_v20 }
 0x8cf   :  { %v398_v23 = vshrl.u32 %v396_v21, 16 }
 0x8d1   :  { %v400_v24 = vrot.slane %v398_v23, 1 }
 0x8d3   :  { %401 = vrot.lane.b32.xlu0 %v400_v24, %s823_s4 }
 0x945   :  { %v402_v25 = vpop.permute.xlu0 %401 }
 0x946   :  { %725 = vmatmul.msk.bf16.vlgmr.msrb.gmra.mxu1 %vm114_vm7, %v402_v25 }
 0x9c3   :  { %v415_v26 = vpop.f32.mrf.mxu1 }
 0x9c4   :  { %v420_v27 = vrot.slane %v415_v26, 4 }
 0x9c6   :  { %v422_v28 = vadd.f32 %v420_v27, %v933_v32 }
 0x9c8   :  { %774 = vtanh.f32 %v422_v28  ;;  %v726_v31 = vmul.f32 -1.442695, %v422_v28 }
 0x9ca   :  { %776 = vpow2.f32 %v726_v31 }
 0x9cb   :  { %v417_v29 = vpop.f32.mrf.mxu1 }
 0x9ce   :  { %v775_v30 = vpop.eup %774 }
 0x9cf   :  { %448 = vrot.lane.b32.xlu1 %v775_v30, %s822_s9 }
 0x9d0   :  { %v777_v33 = vpop.eup %776 }
 0x9d1   :  { %v426_v34 = vadd.f32 1.0, %v777_v33 }
 0x9d3   :  { %778 = vrcp.f32 %v426_v34  ;;  %v438_v40 = vand.u32 2147483648, %v426_v34  ;;  %vm432_vm14 = vweird.f32 %v426_v34  ;;  %v436_v41 = vand.u32 2147483647, %v426_v34 }
 0x9d5   :  { %v439_v43 = vor.u32 1.1754944e-38, %v438_v40  ;;  %vm437_vm8 = vcmp.eq.f32.partialorder %v436_v41, 8.507059e+37 }
 0x9d9   :  { %v779_v35 = vpop.eup %778 }
 0x9da   :  { %v428_v36 = vmul.f32 %v779_v35, %v426_v34  ;;  %vm433_vm2 = vweird.f32 %v779_v35 }
 0x9db   :  { %vm434_vm15 = vmor %vm432_vm14, %vm433_vm2 }
 0x9dc   :  { %v429_v37 = vsub.f32 1.0, %v428_v36 }
 0x9de   :  { %v430_v38 = vmul.f32 %v779_v35, %v429_v37 }
 0x9e0   :  { %v431_v39 = vadd.f32 %v779_v35, %v430_v38 }
 0x9e2   :  { %v435_v42 = vsel %vm434_vm15, %v779_v35, %v431_v39  ;;  %vm679_vm15 = vcmask 253952  }
 0x9e3   :  { %v440_v45 = vsel %vm437_vm8, %v439_v43, %v435_v42 }
 0x9e4   :  { %v446_v48 = vmul.f32 %v444_v47, %v440_v45 }
 0xa41   :  { %v449_v44 = vpop.permute.xlu1 %448 }
 0xa42   :  { %v451_v46 = vmul.f32 %v449_v44, %v440_v45 }
 0xa44   :  { %453 = vrot.lane.b32.xlu2 %v451_v46, %s823_s4 }
 0xa9e   :  { %v454_v49 = vpop.permute.xlu2 %453 }
 0xa9f   :  { %v456_v50 = vadd.f32 %v454_v49, %v446_v48 }
 0xaa1   :  { %780 = vtanh.f32 %v456_v50  ;;  %v509_v14 = vrot.slane %v456_v50, 7 }
 0xaa7   :  { %v781_v51 = vpop.eup %780 }
 0xaa8   :  { %459 = vrot.lane.b32.xlu0 %v781_v51, %s822_s9 }
 0xb1a   :  { %v460_v52 = vpop.permute.xlu0 %459 }
 0xb1b   :  { %v462_v53 = vmul.f32 %v460_v52, %v440_v45 }
 0xb1d   :  { %v463_v54 = vpack.c.bf16 %v462_v53, %v462_v53  ;;  %v667_v55 = vsel %vm85_vm3, %v666_v22, %v462_v53 }
 0xb1f   :  { %v465_v57 = vrot.slane %v463_v54, 2 }
 0xb21   :  { %466 = vrot.lane.b32.xlu1 %v465_v57, %s823_s4 }
 0xb93   :  { %v467_v58 = vpop.permute.xlu1 %466 }
 0xb94   :  { %727 = vmatmul.msk.bf16.vlgmr.msrb.gmra.mxu2 %vm114_vm7, %v467_v58 }
 0xc17   :  { %v480_v59 = vpop.f32.mrf.mxu2 }
 0xc18   :  { %v485_v60 = vrot.slane %v480_v59, 3 }
 0xc1a   :  { %v487_v61 = vadd.f32 %v485_v60, %v933_v32 }
 0xc1c   :  { %782 = vtanh.f32 %v487_v61  ;;  %v728_v0 = vmul.f32 -1.442695, %v487_v61 }
 0xc1e   :  { %784 = vpow2.f32 %v728_v0 }
 0xc1f   :  { %v482_v62 = vpop.f32.mrf.mxu2 }
 0xc22   :  { %v783_v63 = vpop.eup %782 }
 0xc23   :  { %513 = vrot.lane.b32.xlu2 %v783_v63, %s822_s9 }
 0xc24   :  { %v785_v56 = vpop.eup %784 }
 0xc25   :  { %v491_v1 = vadd.f32 1.0, %v785_v56 }
 0xc27   :  { %786 = vrcp.f32 %v491_v1  ;;  %v503_v7 = vand.u32 2147483648, %v491_v1  ;;  %vm497_vm9 = vweird.f32 %v491_v1  ;;  %v501_v8 = vand.u32 2147483647, %v491_v1 }
 0xc29   :  { %v504_v10 = vor.u32 1.1754944e-38, %v503_v7  ;;  %vm502_vm11 = vcmp.eq.f32.partialorder %v501_v8, 8.507059e+37 }
 0xc2d   :  { %v787_v2 = vpop.eup %786 }
 0xc2e   :  { %v493_v3 = vmul.f32 %v787_v2, %v491_v1  ;;  %vm498_vm3 = vweird.f32 %v787_v2 }
 0xc2f   :  { %vm499_vm10 = vmor %vm497_vm9, %vm498_vm3 }
 0xc30   :  { %v494_v4 = vsub.f32 1.0, %v493_v3 }
 0xc32   :  { %v495_v5 = vmul.f32 %v787_v2, %v494_v4 }
 0xc34   :  { %v496_v6 = vadd.f32 %v787_v2, %v495_v5 }
 0xc36   :  { %v500_v9 = vsel %vm499_vm10, %v787_v2, %v496_v6 }
 0xc37   :  { %v505_v12 = vsel %vm502_vm11, %v504_v10, %v500_v9 }
 0xc38   :  { %v511_v15 = vmul.f32 %v509_v14, %v505_v12 }
 0xc7d   :  { %v514_v11 = vpop.permute.xlu2 %513 }
 0xc7e   :  { %v516_v13 = vmul.f32 %v514_v11, %v505_v12 }
 0xc80   :  { %518 = vrot.lane.b32.xlu0 %v516_v13, %s823_s4 }
 0xcf2   :  { %v519_v16 = vpop.permute.xlu0 %518 }
 0xcf3   :  { %v521_v17 = vadd.f32 %v519_v16, %v511_v15 }
 0xcf5   :  { %788 = vtanh.f32 %v521_v17  ;;  %v576_v47 = vrot.slane %v521_v17, 7 }
 0xcfb   :  { %v789_v18 = vpop.eup %788 }
 0xcfc   :  { %524 = vrot.lane.b32.xlu1 %v789_v18, %s822_s9 }
 0xd6e   :  { %v525_v19 = vpop.permute.xlu1 %524 }
 0xd6f   :  { %v527_v20 = vmul.f32 %v525_v19, %v505_v12 }
 0xd71   :  { %v528_v21 = vpack.c.bf16 %v527_v20, %v527_v20  ;;  %v668_v22 = vsel %vm87_vm4, %v667_v55, %v527_v20 }
 0xd73   :  { %v530_v23 = vshrl.u32 %v528_v21, 16 }
 0xd75   :  { %v532_v24 = vrot.slane %v530_v23, 2 }
 0xd77   :  { %533 = vrot.lane.b32.xlu2 %v532_v24, %s823_s4 }
 0xdd1   :  { %v534_v25 = vpop.permute.xlu2 %533 }
 0xdd2   :  { %729 = vmatmul.msk.bf16.vlgmr.msrb.gmra.mxu3 %vm114_vm7, %v534_v25 }
 0xe55   :  { %v547_v26 = vpop.f32.mrf.mxu3 }
 0xe56   :  { %v552_v27 = vrot.slane %v547_v26, 2 }
 0xe58   :  { %v554_v28 = vadd.f32 %v552_v27, %v933_v32 }
 0xe5a   :  { %790 = vtanh.f32 %v554_v28  ;;  %v730_v31 = vmul.f32 -1.442695, %v554_v28 }
 0xe5c   :  { %792 = vpow2.f32 %v730_v31 }
 0xe5d   :  { %v549_v29 = vpop.f32.mrf.mxu3 }
 0xe60   :  { %v791_v30 = vpop.eup %790 }
 0xe61   :  { %580 = vrot.lane.b32.xlu0 %v791_v30, %s822_s9 }
 0xe62   :  { %v793_v33 = vpop.eup %792 }
 0xe63   :  { %v558_v34 = vadd.f32 1.0, %v793_v33 }
 0xe65   :  { %794 = vrcp.f32 %v558_v34  ;;  %v570_v40 = vand.u32 2147483648, %v558_v34  ;;  %vm564_vm0 = vweird.f32 %v558_v34  ;;  %v568_v41 = vand.u32 2147483647, %v558_v34 }
 0xe67   :  { %v571_v43 = vor.u32 1.1754944e-38, %v570_v40  ;;  %vm569_vm12 = vcmp.eq.f32.partialorder %v568_v41, 8.507059e+37 }
 0xe6b   :  { %v795_v35 = vpop.eup %794 }
 0xe6c   :  { %v560_v36 = vmul.f32 %v795_v35, %v558_v34  ;;  %vm565_vm4 = vweird.f32 %v795_v35 }
 0xe6d   :  { %vm566_vm1 = vmor %vm564_vm0, %vm565_vm4 }
 0xe6e   :  { %v561_v37 = vsub.f32 1.0, %v560_v36 }
 0xe70   :  { %v562_v38 = vmul.f32 %v795_v35, %v561_v37 }
 0xe72   :  { %v563_v39 = vadd.f32 %v795_v35, %v562_v38 }
 0xe74   :  { %v567_v42 = vsel %vm566_vm1, %v795_v35, %v563_v39 }
 0xe75   :  { %v572_v45 = vsel %vm569_vm12, %v571_v43, %v567_v42 }
 0xe76   :  { %v578_v48 = vmul.f32 %v576_v47, %v572_v45 }
 0xed3   :  { %v581_v44 = vpop.permute.xlu0 %580 }
 0xed4   :  { %v583_v46 = vmul.f32 %v581_v44, %v572_v45 }
 0xed6   :  { %585 = vrot.lane.b32.xlu1 %v583_v46, %s823_s4 }
 0xf48   :  { %v586_v49 = vpop.permute.xlu1 %585 }
 0xf49   :  { %v588_v50 = vadd.f32 %v586_v49, %v578_v48 }
 0xf4b   :  { %796 = vtanh.f32 %v588_v50  ;;  %v641_v13 = vrot.slane %v588_v50, 7 }
 0xf51   :  { %v797_v51 = vpop.eup %796 }
 0xf52   :  { %591 = vrot.lane.b32.xlu2 %v797_v51, %s822_s9 }
 0xfac   :  { %v592_v52 = vpop.permute.xlu2 %591 }
 0xfad   :  { %v594_v53 = vmul.f32 %v592_v52, %v572_v45 }
 0xfaf   :  { %v595_v54 = vpack.c.bf16 %v594_v53, %v594_v53  ;;  %v669_v55 = vsel %vm89_vm5, %v668_v22, %v594_v53 }
 0xfb1   :  { %v597_v57 = vrot.slane %v595_v54, 3 }
 0xfb3   :  { %598 = vrot.lane.b32.xlu0 %v597_v57, %s823_s4 }
0x1025   :  { %v599_v58 = vpop.permute.xlu0 %598 }
0x1026   :  { %731 = vmatmul.msk.bf16.vlgmr.msra.gmra.mxu0 %vm114_vm7, %v599_v58 }
0x10a3   :  { %v612_v59 = vpop.f32.mrf.mxu0 }
0x10a4   :  { %v617_v60 = vrot.slane %v612_v59, 1 }
0x10a6   :  { %v619_v61 = vadd.f32 %v617_v60, %v933_v32 }
0x10a8   :  { %798 = vtanh.f32 %v619_v61  ;;  %v732_v0 = vmul.f32 -1.442695, %v619_v61 }
0x10aa   :  { %800 = vpow2.f32 %v732_v0 }
0x10ab   :  { %v614_v62 = vpop.f32.mrf.mxu0 }
0x10ae   :  { %v799_v63 = vpop.eup %798 }
0x10af   :  { %645 = vrot.lane.b32.xlu1 %v799_v63, %s822_s9 }
0x10b0   :  { %v801_v56 = vpop.eup %800 }
0x10b1   :  { %v623_v1 = vadd.f32 1.0, %v801_v56 }
0x10b3   :  { %802 = vrcp.f32 %v623_v1  ;;  %v635_v7 = vand.u32 2147483648, %v623_v1  ;;  %vm629_vm13 = vweird.f32 %v623_v1  ;;  %v633_v8 = vand.u32 2147483647, %v623_v1 }
0x10b5   :  { %v636_v9 = vor.u32 1.1754944e-38, %v635_v7  ;;  %vm634_vm14 = vcmp.eq.f32.partialorder %v633_v8, 8.507059e+37 }
0x10b9   :  { %v803_v2 = vpop.eup %802 }
0x10ba   :  { %v625_v3 = vmul.f32 %v803_v2, %v623_v1  ;;  %vm630_vm5 = vweird.f32 %v803_v2 }
0x10bb   :  { %vm631_vm2 = vmor %vm629_vm13, %vm630_vm5 }
0x10bc   :  { %v626_v4 = vsub.f32 1.0, %v625_v3 }
0x10be   :  { %v627_v5 = vmul.f32 %v803_v2, %v626_v4 }
0x10c0   :  { %v628_v6 = vadd.f32 %v803_v2, %v627_v5 }
0x10c2   :  { %v632_v32 = vsel %vm631_vm2, %v803_v2, %v628_v6 }
0x10c3   :  { %v637_v11 = vsel %vm634_vm14, %v636_v9, %v632_v32 }
0x10c4   :  { %v643_v14 = vmul.f32 %v641_v13, %v637_v11 }
0x1121   :  { %v646_v10 = vpop.permute.xlu1 %645 }
0x1122   :  { %v648_v12 = vmul.f32 %v646_v10, %v637_v11 }
0x1124   :  { %650 = vrot.lane.b32.xlu2 %v648_v12, %s823_s4 }
0x117e   :  { %v651_v15 = vpop.permute.xlu2 %650 }
0x117f   :  { %v653_v16 = vadd.f32 %v651_v15, %v643_v14 }
0x1181   :  { %804 = vtanh.f32 %v653_v16  ;;  %v661_v17 = vrot.slane %v653_v16, 7 }
0x1183   :  { %662 = vrot.lane.b32.xlu1 %v661_v17, %s822_s9 }
0x1187   :  { %v805_v18 = vpop.eup %804 }
0x1188   :  { %656 = vrot.lane.b32.xlu0 %v805_v18, %s822_s9 }
0x11f5   :  { %v663_v19 = vpop.permute.xlu1 %662 }
0x11f6   :  { %674 = vrot.lane.b32.xlu0 %v663_v19, %s823_s4 }
0x11fa   :  { %v657_v20 = vpop.permute.xlu0 %656 }
0x11fb   :  { %v659_v21 = vmul.f32 %v657_v20, %v637_v11 }
0x11fd   :  { %v670_v22 = vsel %vm91_vm6, %v669_v55, %v659_v21 }
0x11fe   :  { %672 = vrot.lane.b32.xlu2 %v670_v22, %s823_s4 }
0x1258   :  { %v673_v23 = vpop.permute.xlu2 %672 }
0x1259   :  { %678 = vst.msk [vmem:[%s1008_s5] sm:$0xff] %vm114_vm7, %v673_v23 }
0x1268   :  { %v675_v24 = vpop.permute.xlu0 %674 }
0x1269   :  { %680 = vst.msk [vmem:[%s1008_s5 + $0x8] sm:$0x1] %vm679_vm15, %v675_v24 }
0x126a   :  { %685 = vsyncpa [#allocation3], 1 }

</bundles_post_ra>
